<compile_context>
chip_gen: v5e
topology: v5e:2x2
jax: 0.10.0
libtpu: 0.0.40
codegen_flags: <defaults>
</compile_context>

<pallas_src>
import functools

import jax
import jax.numpy as jnp
from jax.experimental import pallas as pl
from jax.experimental.pallas import tpu as pltpu


# ----------------------------------------------------------------------------
# Fused Pallas kernel: conv1 (K1 hops) + n_layers TAGConv (K2 hops) + classifier
# ----------------------------------------------------------------------------
def _gcn_fused_kernel(n_layers, K1, K2, D,
                      a_ref, x_ref, w_ref, b_ref, o_ref):
    """Whole GCN forward on one VMEM-resident block.

    a_ref: (N, N)            f32  normalized dense adjacency (D^-1/2 A D^-1/2, no self-loops)
    x_ref: (N, D)            f32  node features
    w_ref: (R, D)            f32  packed weights, rows = [conv1 (K1+1)*D | convs n*(K2+1)*D | cls D]
    b_ref: (n_layers+2, D)   f32  packed biases,  rows = [conv1 | convs... | cls]
    o_ref: (N, D)            f32  logits (D < 128 -> masked stores; fine at this size)
    """
    f32 = jnp.float32
    a = a_ref[...]          # read once, reused by every layer
    h = x_ref[...]

    # A^(2^i) powers shared by conv1 (K1 hops) and all stacked layers (K2 hops).
    # Each power depends only on the previous one -> log-depth chain; each is a
    # tiny (N,N)x(N,N) matmul that sits off the hop critical path.
    max_k = max(K1, K2)
    powers = [a]
    while (1 << len(powers)) <= max_k:
        powers.append(
            jnp.dot(powers[-1], powers[-1], preferred_element_type=f32))

    def tag_hops(h0, K):
        # Returns [h0 | h1 | ... | hK] lane-concatenated (hop-major), computed
        # with power doubling + lane-batched RHS:
        #   [h_m .. h_{m+need-1}] = A^m @ [h0 .. h_{need-1}], need = min(m, K+1-m)
        hops = h0
        m, step = 1, 0
        while m <= K:                      # static -> fully unrolled
            need = min(m, K + 1 - m)
            new = jnp.dot(powers[step], hops[:, : need * D],
                          preferred_element_type=f32)
            hops = jnp.concatenate([hops, new], axis=-1)
            m += need
            step += 1
        return hops                        # (N, (K+1)*D)

    def tag_layer(h_in, w_flat, b, K):
        hcat = tag_hops(h_in, K)
        # ONE MXU contraction over depth (K+1)*D instead of K+1 tiny matmuls.
        return jnp.tanh(jnp.dot(hcat, w_flat, preferred_element_type=f32) + b)

    rows1 = (K1 + 1) * D
    rows2 = (K2 + 1) * D

    # conv1 (K = K1)
    h = tag_layer(h, w_ref[0:rows1, :], b_ref[0:1, :], K1)
    # stacked TAGConvs (K = K2); n_layers static -> unrolled
    for l in range(n_layers):
        lo = rows1 + l * rows2             # multiple of 8 -> sublane-aligned slice
        h = tag_layer(h, w_ref[lo:lo + rows2, :], b_ref[1 + l:2 + l, :], K2)
    # classifier (Linear)
    lo = rows1 + n_layers * rows2
    o_ref[...] = (jnp.dot(h, w_ref[lo:lo + D, :], preferred_element_type=f32)
                  + b_ref[1 + n_layers:2 + n_layers, :])


# ----------------------------------------------------------------------------
# One-time parameter packing (hoisted out of the hot path)
# ----------------------------------------------------------------------------
def pack_params(params, K1, K2):
    """Pack all weights into a single (R, D) f32 slab and all biases into a
    single (n_layers+2, D) f32 slab.  Row order is hop-major and matches the
    in-kernel lane-concatenation order of [h0..hK]."""
    D = params["cls_w"].shape[0]
    w1 = params["conv1_w"].reshape((K1 + 1) * D, -1)
    ws = [w.reshape((K2 + 1) * D, -1) for w in params["convs_w"]]
    w_all = jnp.concatenate([w1] + ws + [params["cls_w"]], axis=0).astype(jnp.float32)
    b_all = jnp.concatenate(
        [params["conv1_b"]] + list(params["convs_b"]) + [params["cls_b"]],
        axis=0).astype(jnp.float32)
    return w_all, b_all


# ----------------------------------------------------------------------------
# Wrapper: one pallas_call for the whole forward (jitted, no per-call reshapes)
# ----------------------------------------------------------------------------
@functools.partial(jax.jit, static_argnames=("K1", "K2", "n_layers"))
def gcn_forward(a_norm, x, w_all, b_all, *, K1, K2, n_layers):
    N, D = x.shape
    kernel = functools.partial(_gcn_fused_kernel, n_layers, K1, K2, D)
    vmem = pl.BlockSpec(memory_space=pltpu.MemorySpace.VMEM)
    return pl.pallas_call(
        kernel,
        out_shape=jax.ShapeDtypeStruct((N, D), jnp.float32),
        in_specs=[vmem, vmem, vmem, vmem],
        out_specs=vmem,
    )(a_norm, x, w_all, b_all)


# ----------------------------------------------------------------------------
# Pure-JAX f32 reference (for validation)
# ----------------------------------------------------------------------------
def gcn_reference(params, x, a_norm, K1=10, K2=3):
    def tag(h, w, b, K):
        hops = [h]
        hk = h
        for _ in range(K):
            hk = a_norm @ hk
            hops.append(hk)
        acc = sum(hops[k] @ w[k] for k in range(K + 1)) + b
        return jnp.tanh(acc)

    h = tag(x, params["conv1_w"], params["conv1_b"], K1)
    for w, b in zip(params["convs_w"], params["convs_b"]):
        h = tag(h, w, b, K2)
    return h @ params["cls_w"] + params["cls_b"]


# ----------------------------------------------------------------------------
# Glue: graph normalization + parameter setup
# ----------------------------------------------------------------------------
def build_norm_adj(edge_index, num_nodes):
    """Dense D^{-1/2} A D^{-1/2} (no self-loops), matching TAGConv's default
    normalization for an undirected edge_index."""
    src, dst = edge_index[0], edge_index[1]
    a = jnp.zeros((num_nodes, num_nodes), jnp.float32).at[dst, src].add(1.0)
    deg = a.sum(axis=1)
    dinv = jnp.where(deg > 0, 1.0 / jnp.sqrt(deg), 0.0)
    return a * dinv[:, None] * dinv[None, :]


def glorot(key, shape):
    fan_in, fan_out = shape[-2], shape[-1]
    limit = jnp.sqrt(6.0 / (fan_in + fan_out))
    return jax.random.uniform(key, shape, jnp.float32, -limit, limit)


def init_gcn_params(key, input_dim, output_dim, K=10, K2=3, n_layers=1):
    keys = jax.random.split(key, 2 + n_layers)
    return {
        "conv1_w": glorot(keys[0], (K + 1, input_dim, output_dim)),
        "conv1_b": jnp.zeros((1, output_dim), jnp.float32),
        "convs_w": [
            glorot(keys[1 + i], (K2 + 1, input_dim, output_dim))
            for i in range(n_layers)
        ],
        "convs_b": [jnp.zeros((1, output_dim), jnp.float32) for _ in range(n_layers)],
        "cls_w": glorot(keys[-1], (input_dim, output_dim)),
        "cls_b": jnp.zeros((1, output_dim), jnp.float32),
    }


# ----------------------------------------------------------------------------
if __name__ == "__main__":
    N = 16          # graph nodes
    D = 32          # input_dim == output_dim (required by the reference module)
    K = 10
    K2 = 3
    n_layers = 1

    key = jax.random.PRNGKey(0)
    k_x, k_p = jax.random.split(key)

    # node features
    x = jax.random.normal(k_x, (N, D), jnp.float32)

    # undirected ring graph + chords, as edge_index (2, E)
    idx = jnp.arange(N)
    src = jnp.concatenate([idx, (idx + 1) % N, idx, (idx + 4) % N])
    dst = jnp.concatenate([(idx + 1) % N, idx, (idx + 4) % N, idx])
    edge_index = jnp.stack([src, dst], axis=0)

    a_norm = build_norm_adj(edge_index, N)
    params = init_gcn_params(k_p, D, D, K=K, K2=K2, n_layers=n_layers)

    # one-time packing (hoisted out of the per-forward hot path)
    w_all, b_all = pack_params(params, K, K2)

    out = gcn_forward(a_norm, x, w_all, b_all, K1=K, K2=K2, n_layers=n_layers)
    out = jax.block_until_ready(out)

    assert out.shape == (N, D) and out.dtype == jnp.float32
    ref = gcn_reference(params, x, a_norm, K1=K, K2=K2)
    max_err = float(jnp.max(jnp.abs(out - ref)))
    # All-f32 operands now; residual difference comes only from default MXU
    # matmul precision + the log-depth vs. serial hop ordering (typically ~1e-3).
    assert max_err < 0.1, f"max abs error vs f32 reference too large: {max_err}"

    print("KERNEL_OK")
</pallas_src>

<mosaic_0001>
module attributes {stable_mosaic.version = 11 : i64} {
  func.func @_gcn_fused_kernel(%arg0: memref<16x16xf32, #tpu.memory_space<vmem>>, %arg1: memref<16x32xf32, #tpu.memory_space<vmem>>, %arg2: memref<512x32xf32, #tpu.memory_space<vmem>>, %arg3: memref<3x32xf32, #tpu.memory_space<vmem>>, %arg4: memref<16x32xf32, #tpu.memory_space<vmem>>) attributes {dimension_semantics = [], scalar_prefetch = 0 : i64, scratch_operands = 0 : i64, tpu.core_type = #tpu.core_type<tc>} {
    %c0 = arith.constant 0 : index
    %c0_0 = arith.constant 0 : index
    %0 = vector.load %arg0[%c0, %c0_0] : memref<16x16xf32, #tpu.memory_space<vmem>>, vector<16x16xf32>
    %c0_1 = arith.constant 0 : index
    %c0_2 = arith.constant 0 : index
    %1 = vector.load %arg1[%c0_1, %c0_2] : memref<16x32xf32, #tpu.memory_space<vmem>>, vector<16x32xf32>
    %cst = arith.constant dense<0.000000e+00> : vector<16x16xf32>
    %2 = tpu.matmul %0, %0, %cst {dimension_numbers = #tpu.dot_dimension_numbers<[1], [0], [0], [1], [0, 0, 1, 1], [], []>} : vector<16x16xf32>, vector<16x16xf32>, vector<16x16xf32> -> vector<16x16xf32>
    %cst_3 = arith.constant dense<0.000000e+00> : vector<16x16xf32>
    %3 = tpu.matmul %2, %2, %cst_3 {dimension_numbers = #tpu.dot_dimension_numbers<[1], [0], [0], [1], [0, 0, 1, 1], [], []>} : vector<16x16xf32>, vector<16x16xf32>, vector<16x16xf32> -> vector<16x16xf32>
    %cst_4 = arith.constant dense<0.000000e+00> : vector<16x16xf32>
    %4 = tpu.matmul %3, %3, %cst_4 {dimension_numbers = #tpu.dot_dimension_numbers<[1], [0], [0], [1], [0, 0, 1, 1], [], []>} : vector<16x16xf32>, vector<16x16xf32>, vector<16x16xf32> -> vector<16x16xf32>
    %c0_5 = arith.constant 0 : index
    %c0_6 = arith.constant 0 : index
    %5 = vector.load %arg2[%c0_5, %c0_6] : memref<512x32xf32, #tpu.memory_space<vmem>>, vector<352x32xf32>
    %c0_7 = arith.constant 0 : index
    %c0_8 = arith.constant 0 : index
    %6 = vector.load %arg3[%c0_7, %c0_8] : memref<3x32xf32, #tpu.memory_space<vmem>>, vector<1x32xf32>
    %cst_9 = arith.constant dense<0.000000e+00> : vector<16x32xf32>
    %7 = tpu.matmul %0, %1, %cst_9 {dimension_numbers = #tpu.dot_dimension_numbers<[1], [0], [0], [1], [0, 0, 1, 1], [], []>} : vector<16x16xf32>, vector<16x32xf32>, vector<16x32xf32> -> vector<16x32xf32>
    %8 = tpu.concatenate %1, %7 in 1 : vector<16x32xf32>, vector<16x32xf32> -> vector<16x64xf32>
    %cst_10 = arith.constant dense<0.000000e+00> : vector<16x64xf32>
    %9 = tpu.matmul %2, %8, %cst_10 {dimension_numbers = #tpu.dot_dimension_numbers<[1], [0], [0], [1], [0, 0, 1, 1], [], []>} : vector<16x16xf32>, vector<16x64xf32>, vector<16x64xf32> -> vector<16x64xf32>
    %10 = tpu.concatenate %8, %9 in 1 : vector<16x64xf32>, vector<16x64xf32> -> vector<16x128xf32>
    %cst_11 = arith.constant dense<0.000000e+00> : vector<16x128xf32>
    %11 = tpu.matmul %3, %10, %cst_11 {dimension_numbers = #tpu.dot_dimension_numbers<[1], [0], [0], [1], [0, 0, 1, 1], [], []>} : vector<16x16xf32>, vector<16x128xf32>, vector<16x128xf32> -> vector<16x128xf32>
    %12 = tpu.concatenate %10, %11 in 1 : vector<16x128xf32>, vector<16x128xf32> -> vector<16x256xf32>
    %13 = vector.extract_strided_slice %12 {offsets = [0, 0], sizes = [16, 96], strides = [1, 1]} : vector<16x256xf32> to vector<16x96xf32>
    %cst_12 = arith.constant dense<0.000000e+00> : vector<16x96xf32>
    %14 = tpu.matmul %4, %13, %cst_12 {dimension_numbers = #tpu.dot_dimension_numbers<[1], [0], [0], [1], [0, 0, 1, 1], [], []>} : vector<16x16xf32>, vector<16x96xf32>, vector<16x96xf32> -> vector<16x96xf32>
    %15 = tpu.concatenate %12, %14 in 1 : vector<16x256xf32>, vector<16x96xf32> -> vector<16x352xf32>
    %cst_13 = arith.constant dense<0.000000e+00> : vector<16x32xf32>
    %16 = tpu.matmul %15, %5, %cst_13 {dimension_numbers = #tpu.dot_dimension_numbers<[1], [0], [0], [1], [0, 0, 1, 1], [], []>} : vector<16x352xf32>, vector<352x32xf32>, vector<16x32xf32> -> vector<16x32xf32>
    %17 = vector.broadcast %6 : vector<1x32xf32> to vector<16x32xf32>
    %18 = arith.addf %16, %17 : vector<16x32xf32>
    %19 = math.tanh %18 : vector<16x32xf32>
    %c352 = arith.constant 352 : index
    %c0_14 = arith.constant 0 : index
    %20 = vector.load %arg2[%c352, %c0_14] : memref<512x32xf32, #tpu.memory_space<vmem>>, vector<128x32xf32>
    %c1 = arith.constant 1 : index
    %c0_15 = arith.constant 0 : index
    %21 = vector.load %arg3[%c1, %c0_15] : memref<3x32xf32, #tpu.memory_space<vmem>>, vector<1x32xf32>
    %cst_16 = arith.constant dense<0.000000e+00> : vector<16x32xf32>
    %22 = tpu.matmul %0, %19, %cst_16 {dimension_numbers = #tpu.dot_dimension_numbers<[1], [0], [0], [1], [0, 0, 1, 1], [], []>} : vector<16x16xf32>, vector<16x32xf32>, vector<16x32xf32> -> vector<16x32xf32>
    %23 = tpu.concatenate %19, %22 in 1 : vector<16x32xf32>, vector<16x32xf32> -> vector<16x64xf32>
    %cst_17 = arith.constant dense<0.000000e+00> : vector<16x64xf32>
    %24 = tpu.matmul %2, %23, %cst_17 {dimension_numbers = #tpu.dot_dimension_numbers<[1], [0], [0], [1], [0, 0, 1, 1], [], []>} : vector<16x16xf32>, vector<16x64xf32>, vector<16x64xf32> -> vector<16x64xf32>
    %25 = tpu.concatenate %23, %24 in 1 : vector<16x64xf32>, vector<16x64xf32> -> vector<16x128xf32>
    %cst_18 = arith.constant dense<0.000000e+00> : vector<16x32xf32>
    %26 = tpu.matmul %25, %20, %cst_18 {dimension_numbers = #tpu.dot_dimension_numbers<[1], [0], [0], [1], [0, 0, 1, 1], [], []>} : vector<16x128xf32>, vector<128x32xf32>, vector<16x32xf32> -> vector<16x32xf32>
    %27 = vector.broadcast %21 : vector<1x32xf32> to vector<16x32xf32>
    %28 = arith.addf %26, %27 : vector<16x32xf32>
    %29 = math.tanh %28 : vector<16x32xf32>
    %c480 = arith.constant 480 : index
    %c0_19 = arith.constant 0 : index
    %30 = vector.load %arg2[%c480, %c0_19] : memref<512x32xf32, #tpu.memory_space<vmem>>, vector<32x32xf32>
    %cst_20 = arith.constant dense<0.000000e+00> : vector<16x32xf32>
    %31 = tpu.matmul %29, %30, %cst_20 {dimension_numbers = #tpu.dot_dimension_numbers<[1], [0], [0], [1], [0, 0, 1, 1], [], []>} : vector<16x32xf32>, vector<32x32xf32>, vector<16x32xf32> -> vector<16x32xf32>
    %c2 = arith.constant 2 : index
    %c0_21 = arith.constant 0 : index
    %32 = vector.load %arg3[%c2, %c0_21] : memref<3x32xf32, #tpu.memory_space<vmem>>, vector<1x32xf32>
    %33 = vector.broadcast %32 : vector<1x32xf32> to vector<16x32xf32>
    %34 = arith.addf %31, %33 : vector<16x32xf32>
    %c0_22 = arith.constant 0 : index
    %c0_23 = arith.constant 0 : index
    %35 = vector.load %arg4[%c0_22, %c0_23] : memref<16x32xf32, #tpu.memory_space<vmem>>, vector<16x32xf32>
    tpu.vector_store %arg4[%c0_22, %c0_23], %34 {strides = array<i32>} : memref<16x32xf32, #tpu.memory_space<vmem>>, vector<16x32xf32>,
    return
  }
}

</mosaic_0001>

<bundles_post_ra>
// kernel: gcn_forward.1
= control target key start
LH: loop header
LB: loop body
LE: loop exit
PB: predicated region body
PF: predicated region fallthrough
CT: control target
= control target key end

     0   :  { %vm22_vm0 = vcmask 130048   ;;  %s920_s0 = inlined_call_operand.vmem [shape: f32[16,16], index: 0, kind: input, shape index: {}]   ;;  %s921_s1 = inlined_call_operand.vmem [shape: f32[16,32], index: 1, kind: input, shape index: {}]   ;;  %s922_s2 = inlined_call_operand.vmem [shape: f32[512,32], index: 2, kind: input, shape index: {}]   ;;  %s923_s3 = inlined_call_operand.vmem [shape: f32[3,32], index: 3, kind: input, shape index: {}]   ;;  %s924_s4 = inlined_call_operand.hbm [shape: f32[16,32], index: 4, kind: output, shape index: {}]  }
   0x1   :  { %v21_v0 = vld [vmem:[%s921_s1 + $0x8] sm:$0xff]  ;;  %v20_v1 = vld [vmem:[%s921_s1] sm:$0xff] }
   0x2   :  { %v636_v2 = vld [vmem:[%s920_s0] sm:$0xff]  ;;  %169 = vmatpush.msra.mxu3 %v21_v0  ;;  %v641_v3 = vld [vmem:[%s920_s0 + $0x8] sm:$0xff] }
   0x3   :  { %43 = vmatpush.msra.mxu0 %v641_v3 }
   0x4   :  { %9 = vsyncpa [#allocation3], 0  ;;  %170 = vmatpush.msra.mxu3 %v20_v1  ;;  %s597_s0 = smov 32   ;;  %vm186_vm1 = vcmask 261120   ;;  %v125_v16 = vld [vmem:[%s922_s2 + $0x78] sm:$0xff]  ;;  %v124_v17 = vld [vmem:[%s922_s2 + $0x70] sm:$0xff] }
   0x5   :  { %524 = vmatmul.msk.f32.vlgmr.msra.gmra.mxu3 %vm22_vm0, %v636_v2  ;;  %44 = vmatpush.msra.mxu0 %v636_v2  ;;  %v123_v18 = vld [vmem:[%s922_s2 + $0x68] sm:$0xff]  ;;  %v122_v19 = vld [vmem:[%s922_s2 + $0x60] sm:$0xff]  ;;  %v121_v20 = vld [vmem:[%s922_s2 + $0x58] sm:$0xff]  ;;  %s598_s23 = smov 64   ;;  %vm220_vm2 = vcmask 523264   ;;  %vm276_vm3 = vcmask 785408  }
   0x6   :  { %518 = vmatmul.msk.f32.vlgmr.msra.gmra.mxu0 %vm22_vm0, %v636_v2  ;;  %283 = vmatpush.msrb.mxu3 %v125_v16  ;;  %v120_v21 = vld [vmem:[%s922_s2 + $0x50] sm:$0xff]  ;;  %v119_v22 = vld [vmem:[%s922_s2 + $0x48] sm:$0xff]  ;;  %v118_v23 = vld [vmem:[%s922_s2 + $0x40] sm:$0xff]  ;;  %s506_s26 = sshll.u32 %s924_s4, 4  ;;  %s600_s27 = smov 128   ;;  %s507_s26 = int_to_ptr.hbm [resolvable:$true] %s506_s26 }
   0x7   :  { %v117_v24 = vld [vmem:[%s922_s2 + $0x38] sm:$0xff]  ;;  %v116_v25 = vld [vmem:[%s922_s2 + $0x30] sm:$0xff]  ;;  %v115_v26 = vld [vmem:[%s922_s2 + $0x28] sm:$0xff]  ;;  %s601_s28 = smov 8  }
   0x8   :  { %284 = vmatpush.msrb.mxu3 %v124_v17  ;;  %v114_v27 = vld [vmem:[%s922_s2 + $0x20] sm:$0xff]  ;;  %v113_v29 = vld [vmem:[%s922_s2 + $0x18] sm:$0xff]  ;;  %v112_v30 = vld [vmem:[%s922_s2 + $0x10] sm:$0xff] }
   0x9   :  { %v111_v33 = vld [vmem:[%s922_s2 + $0x8] sm:$0xff]  ;;  %v110_v34 = vld [vmem:[%s922_s2] sm:$0xff]  ;;  %v141_v35 = vld [vmem:[%s922_s2 + $0xf8] sm:$0xff] }
   0xa   :  { %285 = vmatpush.msrb.mxu3 %v123_v18  ;;  %v140_v36 = vld [vmem:[%s922_s2 + $0xf0] sm:$0xff]  ;;  %v139_v37 = vld [vmem:[%s922_s2 + $0xe8] sm:$0xff]  ;;  %v138_v38 = vld [vmem:[%s922_s2 + $0xe0] sm:$0xff] }
   0xb   :  { %v137_v39 = vld [vmem:[%s922_s2 + $0xd8] sm:$0xff]  ;;  %v136_v40 = vld [vmem:[%s922_s2 + $0xd0] sm:$0xff]  ;;  %v135_v41 = vld [vmem:[%s922_s2 + $0xc8] sm:$0xff] }
   0xc   :  { %286 = vmatpush.msrb.mxu3 %v122_v19  ;;  %v134_v42 = vld [vmem:[%s922_s2 + $0xc0] sm:$0xff]  ;;  %v133_v43 = vld [vmem:[%s922_s2 + $0xb8] sm:$0xff]  ;;  %v132_v44 = vld [vmem:[%s922_s2 + $0xb0] sm:$0xff] }
   0xd   :  { %525 = vmatmul.msk.f32.gmra.mxu3 %vm22_vm0, %v641_v3  ;;  %v131_v48 = vld [vmem:[%s922_s2 + $0xa8] sm:$0xff]  ;;  %v153_v52 = vld [vmem:[%s922_s2 + $0x158] sm:$0xff]  ;;  %v130_v53 = vld [vmem:[%s922_s2 + $0xa0] sm:$0xff] }
   0xe   :  { %519 = vmatmul.msk.f32.gmra.mxu0 %vm22_vm0, %v641_v3  ;;  %287 = vmatpush.msrb.mxu3 %v121_v20  ;;  %v152_v54 = vld [vmem:[%s922_s2 + $0x150] sm:$0xff]  ;;  %v129_v55 = vld [vmem:[%s922_s2 + $0x98] sm:$0xff]  ;;  %v151_v56 = vld [vmem:[%s922_s2 + $0x148] sm:$0xff] }
   0xf   :  { %v128_v57 = vld [vmem:[%s922_s2 + $0x90] sm:$0xff]  ;;  %v150_v58 = vld [vmem:[%s922_s2 + $0x140] sm:$0xff]  ;;  %v127_v59 = vld [vmem:[%s922_s2 + $0x88] sm:$0xff] }
  0x10   :  { %288 = vmatpush.msrb.mxu3 %v120_v21  ;;  %v149_v60 = vld [vmem:[%s922_s2 + $0x138] sm:$0xff]  ;;  %v148_v62 = vld [vmem:[%s922_s2 + $0x130] sm:$0xff]  ;;  %v147_v63 = vld [vmem:[%s922_s2 + $0x128] sm:$0xff] }
  0x11   :  { %v560_v17 = vld [vmem:[%s923_s3] ss:$0 sm:$0xff] }
  0x12   :  { %289 = vmatpush.msrb.mxu3 %v119_v22 }
  0x14   :  { %290 = vmatpush.msrb.mxu3 %v118_v23 }
  0x16   :  { %291 = vmatpush.msrb.mxu3 %v117_v24 }
  0x18   :  { %292 = vmatpush.msrb.mxu3 %v116_v25 }
  0x1a   :  { %293 = vmatpush.msrb.mxu3 %v115_v26 }
  0x1c   :  { %294 = vmatpush.msrb.mxu3 %v114_v27 }
  0x1e   :  { %295 = vmatpush.msrb.mxu3 %v113_v29 }
  0x20   :  { %296 = vmatpush.msrb.mxu3 %v112_v30 }
  0x22   :  { %297 = vmatpush.msrb.mxu3 %v111_v33 }
  0x24   :  { %298 = vmatpush.msrb.mxu3 %v110_v34 }
  0x83   :  { %v653_v4 = vpop.f32.mrf.mxu0 }
  0x88   :  { %v172_v5 = vpop.f32.mrf.mxu3 }
  0x8b   :  { %v655_v6 = vpop.f32.mrf.mxu0 }
  0x8c   :  { %72 = vmatpush.msra.mxu1 %v655_v6 }
  0x8e   :  { %73 = vmatpush.msra.mxu1 %v653_v4 }
  0x8f   :  { %520 = vmatmul.msk.f32.vlgmr.msra.gmra.mxu1 %vm22_vm0, %v653_v4 }
  0x90   :  { %v175_v7 = vpop.f32.mrf.mxu3 }
  0x91   :  { %v545_v8 = vpack.i.bf16 %v172_v5, %v175_v7  ;;  %v145_v5 = vld [vmem:[%s922_s2 + $0x118] sm:$0xff]  ;;  %v144_v7 = vld [vmem:[%s922_s2 + $0x110] sm:$0xff] }
  0x93   :  { %546 = vrot.lane.b32.xlu0 %v545_v8, %s597_s0  ;;  %v143_v8 = vld [vmem:[%s922_s2 + $0x108] sm:$0xff] }
  0x97   :  { %521 = vmatmul.msk.f32.gmra.mxu1 %vm22_vm0, %v655_v6 }
 0x105   :  { %v547_v9 = vpop.permute.xlu0 %546 }
 0x106   :  { %v549_v10 = vunpack.i.h.bf16 %v547_v9  ;;  %v548_v11 = vunpack.i.l.bf16 %v547_v9  ;;  %v142_v9 = vld [vmem:[%s922_s2 + $0x100] sm:$0xff] }
 0x108   :  { %v665_v12 = vsel %vm186_vm1, %v21_v0, %v548_v11  ;;  %v669_v13 = vsel %vm186_vm1, %v20_v1, %v549_v10  ;;  %v146_v0 = vld [vmem:[%s922_s2 + $0x120] sm:$0xff] }
 0x109   :  { %203 = vmatpush.msrb.mxu0 %v665_v12  ;;  %v126_v1 = vld [vmem:[%s922_s2 + $0x80] sm:$0xff] }
 0x10b   :  { %204 = vmatpush.msrb.mxu0 %v669_v13 }
 0x10c   :  { %526 = vmatmul.msk.f32.vlgmr.msrb.gmra.mxu0 %vm22_vm0, %v653_v4  ;;  %v674_v14 = vpop.f32.mrf.mxu1 }
 0x10d   :  { %306 = vmatpush.msra.mxu0 %v141_v35 }
 0x10f   :  { %307 = vmatpush.msra.mxu0 %v140_v36 }
 0x111   :  { %308 = vmatpush.msra.mxu0 %v139_v37  ;;  %v367_v37 = vld [vmem:[%s922_s2 + $0x1c8] sm:$0xff] }
 0x113   :  { %309 = vmatpush.msra.mxu0 %v138_v38  ;;  %v364_v38 = vld [vmem:[%s922_s2 + $0x1b0] sm:$0xff] }
 0x114   :  { %527 = vmatmul.msk.f32.gmra.mxu0 %vm22_vm0, %v655_v6  ;;  %v678_v15 = vpop.f32.mrf.mxu1 }
 0x115   :  { %101 = vmatpush.msra.mxu2 %v678_v15  ;;  %310 = vmatpush.msra.mxu0 %v137_v39  ;;  %v363_v39 = vld [vmem:[%s922_s2 + $0x1a8] sm:$0xff] }
 0x117   :  { %102 = vmatpush.msra.mxu2 %v674_v14  ;;  %311 = vmatpush.msra.mxu0 %v136_v40 }
 0x118   :  { %522 = vmatmul.msk.f32.vlgmr.msra.gmra.mxu2 %vm22_vm0, %v674_v14 }
 0x119   :  { %312 = vmatpush.msra.mxu0 %v135_v41 }
 0x11b   :  { %313 = vmatpush.msra.mxu0 %v134_v42  ;;  %v362_v42 = vld [vmem:[%s922_s2 + $0x1a0] sm:$0xff] }
 0x11d   :  { %314 = vmatpush.msra.mxu0 %v133_v43  ;;  %v361_v43 = vld [vmem:[%s922_s2 + $0x198] sm:$0xff] }
 0x11f   :  { %315 = vmatpush.msra.mxu0 %v132_v44  ;;  %v360_v44 = vld [vmem:[%s922_s2 + $0x190] sm:$0xff] }
 0x120   :  { %523 = vmatmul.msk.f32.gmra.mxu2 %vm22_vm0, %v678_v15 }
 0x121   :  { %316 = vmatpush.msra.mxu0 %v131_v48  ;;  %v356_v48 = vld [vmem:[%s922_s2 + $0x170] sm:$0xff] }
 0x123   :  { %317 = vmatpush.msra.mxu0 %v130_v53 }
 0x125   :  { %318 = vmatpush.msra.mxu0 %v129_v55  ;;  %v466_v55 = vld [vmem:[%s922_s2 + $0x1f8] sm:$0xff] }
 0x127   :  { %319 = vmatpush.msra.mxu0 %v128_v57  ;;  %v464_v57 = vld [vmem:[%s922_s2 + $0x1e8] sm:$0xff] }
 0x129   :  { %320 = vmatpush.msra.mxu0 %v127_v59  ;;  %v561_v59 = vld [vmem:[%s923_s3 + $0x1] ss:$0 sm:$0xff] }
 0x12b   :  { %321 = vmatpush.msra.mxu0 %v126_v1 }
 0x189   :  { %v206_v28 = vpop.f32.mrf.mxu0 }
 0x191   :  { %v209_v31 = vpop.f32.mrf.mxu0 }
 0x192   :  { %v550_v32 = vpack.i.bf16 %v206_v28, %v209_v31 }
 0x194   :  { %551 = vrot.lane.b32.xlu0 %v550_v32, %s598_s23 }
 0x19b   :  { %v104_v51 = vpop.f32.mrf.mxu2 }
 0x1a3   :  { %v107_v61 = vpop.f32.mrf.mxu2 }
 0x206   :  { %v552_v45 = vpop.permute.xlu0 %551 }
 0x207   :  { %v554_v46 = vunpack.i.h.bf16 %v552_v45  ;;  %v553_v47 = vunpack.i.l.bf16 %v552_v45  ;;  %v359_v45 = vld [vmem:[%s922_s2 + $0x188] sm:$0xff] }
 0x209   :  { %v222_v49 = vsel %vm220_vm2, %v665_v12, %v553_v47  ;;  %v221_v50 = vsel %vm220_vm2, %v669_v13, %v554_v46  ;;  %v358_v46 = vld [vmem:[%s922_s2 + $0x180] sm:$0xff]  ;;  %v357_v47 = vld [vmem:[%s922_s2 + $0x178] sm:$0xff] }
 0x20a   :  { %237 = vmatpush.msrb.mxu1 %v222_v49  ;;  %266 = vmatpush.msrb.mxu2 %v222_v49 }
 0x20b   :  { %299 = vmatmul.f32.vlgmr.msrb.gmra.mxu3 %v221_v50 }
 0x20c   :  { %238 = vmatpush.msrb.mxu1 %v221_v50  ;;  %267 = vmatpush.msrb.mxu2 %v221_v50  ;;  %v354_v50 = vld [vmem:[%s922_s2 + $0x160] sm:$0xff] }
 0x20d   :  { %528 = vmatmul.msk.f32.vlgmr.msrb.gmra.mxu1 %vm22_vm0, %v674_v14  ;;  %530 = vmatmul.msk.f32.vlgmr.msrb.gmra.mxu2 %vm22_vm0, %v104_v51 }
 0x20e   :  { %333 = vmatpush.msra.mxu1 %v153_v52 }
 0x210   :  { %334 = vmatpush.msra.mxu1 %v152_v54 }
 0x212   :  { %335 = vmatpush.msra.mxu1 %v151_v56  ;;  %v465_v56 = vld [vmem:[%s922_s2 + $0x1f0] sm:$0xff] }
 0x213   :  { %302 = vmatmul.f32.gmra.mxu3 %v222_v49  ;;  %v355_v49 = vld [vmem:[%s922_s2 + $0x168] sm:$0xff] }
 0x214   :  { %336 = vmatpush.msra.mxu1 %v150_v58  ;;  %v463_v58 = vld [vmem:[%s922_s2 + $0x1e0] sm:$0xff] }
 0x215   :  { %529 = vmatmul.msk.f32.gmra.mxu1 %vm22_vm0, %v678_v15  ;;  %531 = vmatmul.msk.f32.gmra.mxu2 %vm22_vm0, %v107_v61 }
 0x216   :  { %337 = vmatpush.msra.mxu1 %v149_v60 }
 0x218   :  { %338 = vmatpush.msra.mxu1 %v148_v62 }
 0x21a   :  { %339 = vmatpush.msra.mxu1 %v147_v63 }
 0x21c   :  { %340 = vmatpush.msra.mxu1 %v146_v0 }
 0x21e   :  { %341 = vmatpush.msra.mxu1 %v145_v5  ;;  %v562_v5 = vld [vmem:[%s923_s3 + $0x2] ss:$0 sm:$0xff] }
 0x220   :  { %342 = vmatpush.msra.mxu1 %v144_v7 }
 0x222   :  { %343 = vmatpush.msra.mxu1 %v143_v8 }
 0x224   :  { %344 = vmatpush.msra.mxu1 %v142_v9 }
 0x226   :  { %487 = vmatpush.msrb.mxu1 %v466_v55 }
 0x228   :  { %488 = vmatpush.msrb.mxu1 %v465_v56 }
 0x22a   :  { %489 = vmatpush.msrb.mxu1 %v464_v57 }
 0x22c   :  { %490 = vmatpush.msrb.mxu1 %v463_v58 }
 0x28a   :  { %v240_v10 = vpop.f32.mrf.mxu1 }
 0x28b   :  { %322 = vmatmul.f32.vlgmr.msra.gmra.mxu0 %v240_v10 }
 0x28e   :  { %v300_v14 = vpop.f32.mrf.mxu3 }
 0x28f   :  { %v301_v20 = vadd.f32 %v560_v17, %v300_v14 }
 0x290   :  { %v269_v11 = vpop.f32.mrf.mxu2 }
 0x291   :  { %532 = vmatmul.msk.f32.vlgmr.msra.gmra.mxu1 %vm276_vm3, %v269_v11 }
 0x292   :  { %v243_v12 = vpop.f32.mrf.mxu1 }
 0x293   :  { %325 = vmatmul.f32.gmra.mxu0 %v243_v12 }
 0x296   :  { %v303_v18 = vpop.f32.mrf.mxu3 }
 0x297   :  { %v304_v21 = vadd.f32 %v560_v17, %v303_v18 }
 0x298   :  { %v272_v13 = vpop.f32.mrf.mxu2 }
 0x299   :  { %533 = vmatmul.msk.f32.gmra.mxu1 %vm276_vm3, %v272_v13 }
 0x308   :  { %v323_v15 = vpop.f32.mrf.mxu0 }
 0x309   :  { %v324_v22 = vadd.f32 %v323_v15, %v301_v20 }
 0x30e   :  { %v346_v16 = vpop.f32.mrf.mxu1 }
 0x30f   :  { %v347_v25 = vadd.f32 %v346_v16, %v324_v22 }
 0x310   :  { %v326_v19 = vpop.f32.mrf.mxu0 }
 0x311   :  { %v327_v23 = vadd.f32 %v326_v19, %v304_v21 }
 0x316   :  { %v349_v24 = vpop.f32.mrf.mxu1 }
 0x317   :  { %v350_v26 = vadd.f32 %v349_v24, %v327_v23 }
 0x319   :  { %563 = vtanh.f32 %v350_v26 }
 0x31a   :  { %565 = vtanh.f32 %v347_v25 }
 0x31f   :  { %v564_v27 = vpop.eup %563 }
 0x320   :  { %385 = vmatpush.msra.mxu2 %v564_v27  ;;  %v566_v28 = vpop.eup %565 }
 0x322   :  { %386 = vmatpush.msra.mxu2 %v566_v28 }
 0x323   :  { %534 = vmatmul.msk.f32.vlgmr.msra.gmra.mxu2 %vm22_vm0, %v636_v2  ;;  %v369_v2 = vld [vmem:[%s922_s2 + $0x1d8] sm:$0xff] }
 0x324   :  { %438 = vmatpush.msra.mxu3 %v369_v2 }
 0x32b   :  { %535 = vmatmul.msk.f32.gmra.mxu2 %vm22_vm0, %v641_v3  ;;  %v368_v3 = vld [vmem:[%s922_s2 + $0x1d0] sm:$0xff] }
 0x32c   :  { %439 = vmatpush.msra.mxu3 %v368_v3 }
 0x32e   :  { %440 = vmatpush.msra.mxu3 %v367_v37 }
 0x3a6   :  { %v388_v29 = vpop.f32.mrf.mxu2 }
 0x3ae   :  { %v391_v30 = vpop.f32.mrf.mxu2 }
 0x3af   :  { %v555_v31 = vpack.i.bf16 %v388_v29, %v391_v30 }
 0x3b1   :  { %556 = vrot.lane.b32.xlu1 %v555_v31, %s597_s0 }
 0x423   :  { %v557_v32 = vpop.permute.xlu1 %556 }
 0x424   :  { %v559_v33 = vunpack.i.h.bf16 %v557_v32  ;;  %v558_v34 = vunpack.i.l.bf16 %v557_v32 }
 0x426   :  { %v403_v35 = vsel %vm186_vm1, %v564_v27, %v558_v34  ;;  %v402_v36 = vsel %vm186_vm1, %v566_v28, %v559_v33 }
 0x427   :  { %418 = vmatpush.msrb.mxu2 %v403_v35 }
 0x429   :  { %419 = vmatpush.msrb.mxu2 %v402_v36 }
 0x42a   :  { %536 = vmatmul.msk.f32.vlgmr.msrb.gmra.mxu2 %vm22_vm0, %v653_v4  ;;  %v366_v4 = vld [vmem:[%s922_s2 + $0x1c0] sm:$0xff] }
 0x42b   :  { %441 = vmatpush.msra.mxu3 %v366_v4 }
 0x432   :  { %537 = vmatmul.msk.f32.gmra.mxu2 %vm22_vm0, %v655_v6  ;;  %v365_v6 = vld [vmem:[%s922_s2 + $0x1b8] sm:$0xff]  ;;  %s599_s2 = smov [#allocation2]  }
 0x433   :  { %442 = vmatpush.msra.mxu3 %v365_v6  ;;  %s504_s1 = sshll.u32 %s599_s2, 4  ;;  %s505_s1 = int_to_ptr.vmem [resolvable:$true] %s504_s1 }
 0x435   :  { %443 = vmatpush.msra.mxu3 %v364_v38 }
 0x437   :  { %444 = vmatpush.msra.mxu3 %v363_v39 }
 0x439   :  { %445 = vmatpush.msra.mxu3 %v362_v42 }
 0x43b   :  { %446 = vmatpush.msra.mxu3 %v361_v43 }
 0x43d   :  { %447 = vmatpush.msra.mxu3 %v360_v44 }
 0x43f   :  { %448 = vmatpush.msra.mxu3 %v359_v45 }
 0x441   :  { %449 = vmatpush.msra.mxu3 %v358_v46 }
 0x443   :  { %450 = vmatpush.msra.mxu3 %v357_v47 }
 0x445   :  { %451 = vmatpush.msra.mxu3 %v356_v48 }
 0x447   :  { %452 = vmatpush.msra.mxu3 %v355_v49 }
 0x449   :  { %453 = vmatpush.msra.mxu3 %v354_v50 }
 0x4ad   :  { %v421_v40 = vpop.f32.mrf.mxu2 }
 0x4ae   :  { %429 = vrot.lane.b32.xlu1 %v421_v40, %s598_s23 }
 0x4b5   :  { %v424_v41 = vpop.f32.mrf.mxu2 }
 0x4b6   :  { %431 = vrot.lane.b32.xlu2 %v424_v41, %s598_s23 }
 0x510   :  { %v432_v53 = vpop.permute.xlu2 %431 }
 0x511   :  { %v436_v54 = vsel %vm220_vm2, %v403_v35, %v432_v53 }
 0x520   :  { %v430_v51 = vpop.permute.xlu1 %429 }
 0x521   :  { %v435_v52 = vsel %vm220_vm2, %v402_v36, %v430_v51 }
 0x522   :  { %454 = vmatmul.f32.vlgmr.msra.gmra.mxu3 %v435_v52 }
 0x52a   :  { %457 = vmatmul.f32.gmra.mxu3 %v436_v54 }
 0x5a5   :  { %v455_v60 = vpop.f32.mrf.mxu3 }
 0x5a6   :  { %v456_v61 = vadd.f32 %v561_v59, %v455_v60 }
 0x5a8   :  { %567 = vtanh.f32 %v456_v61 }
 0x5ad   :  { %v458_v62 = vpop.f32.mrf.mxu3 }
 0x5ae   :  { %v568_v63 = vpop.eup %567  ;;  %v459_v0 = vadd.f32 %v561_v59, %v458_v62 }
 0x5af   :  { %538 = vmatmul.msk.f32.vlgmr.msrb.gmra.mxu1 %vm186_vm1, %v568_v63 }
 0x5b0   :  { %569 = vtanh.f32 %v459_v0 }
 0x5b6   :  { %v570_v1 = vpop.eup %569 }
 0x5b7   :  { %539 = vmatmul.msk.f32.gmra.mxu1 %vm186_vm1, %v570_v1 }
 0x62c   :  { %v492_v7 = vpop.f32.mrf.mxu1 }
 0x62d   :  { %v493_v8 = vadd.f32 %v562_v5, %v492_v7 }
 0x62f   :  { %498 = vst.msk [vmem:[#allocation2] sm:$0xff] %vm186_vm1, %v493_v8 }
 0x634   :  { %v495_v9 = vpop.f32.mrf.mxu1 }
 0x635   :  { %v496_v10 = vadd.f32 %v562_v5, %v495_v9 }
 0x637   :  { %499 = vst.msk [vmem:[#allocation2 + $0x8] sm:$0xff] %vm186_vm1, %v496_v10 }
 0x638   :  { %512 = dma.vmem_to_hbm [thread:$0]  %s505_s1, 256, %s507_s26, [#allocation3], %s600_s27, %s600_s27, %s601_s28  }
 0x639   :  { %595 = dma.done.wait [#allocation3], 256  }
 0x63a   :  { %596 = vsyncadd [#allocation3], 4294967040 }
 0x63b   :  { %517 = vsyncpa [#allocation3], 1 }

</bundles_post_ra>
